<compile_context>
chip_gen: v6e
topology: v6e:2x2x1
jax: 0.10.0
libtpu: 0.0.40
codegen_flags: <defaults>
</compile_context>

<pallas_src>
import jax
import jax.numpy as jnp
from jax.experimental import pallas as pl
from jax.experimental.pallas import tpu as pltpu

LANE = 128
_TARGET_BLOCK_BYTES = 2 * 1024 * 1024  # ~2 MiB per block (sweet spot on all gens)


def _glu_kernel(x_ref, o_ref):
    x = x_ref[...]
    # exp goes to the EUP slot; multiply/add on the VPU. Mem-bound regardless.
    o_ref[...] = x * jax.nn.sigmoid(x)


def _sublane_for(dtype) -> int:
    itemsize = jnp.dtype(dtype).itemsize
    # f32 -> 8, bf16/f16 -> 16, int8/fp8 -> 32
    return max(8, 32 // max(itemsize, 1))


def glu(x: jax.Array) -> jax.Array:
    """Elementwise x * sigmoid(x) via a Pallas TPU kernel (any input shape)."""
    orig_shape = x.shape
    dtype = x.dtype
    n = x.size
    if n == 0:
        return x

    itemsize = jnp.dtype(dtype).itemsize
    sublane = _sublane_for(dtype)

    # Flatten into a lane-dense (rows, 128) slab. Only pad (one extra HBM copy)
    # when the element count is not already a multiple of the lane width.
    x_flat = x.reshape(-1)
    pad = (-n) % LANE
    if pad:
        x_flat = jnp.pad(x_flat, (0, pad))
    rows = x_flat.size // LANE
    x2d = x_flat.reshape(rows, LANE)

    # ~2 MiB blocks, aligned to the dtype's sublane. Cap at ceil(rows/2)
    # (sublane-aligned) so the grid has at least 2 parallel steps when there
    # is enough data to split.
    cap_rows = max(
        sublane, (_TARGET_BLOCK_BYTES // (LANE * itemsize)) // sublane * sublane
    )
    half_rows = -(-rows // 2)
    half_rows_aligned = -(-half_rows // sublane) * sublane
    tile_rows = max(sublane, min(cap_rows, half_rows_aligned))
    grid = (pl.cdiv(rows, tile_rows),)

    out2d = pl.pallas_call(
        _glu_kernel,
        out_shape=jax.ShapeDtypeStruct((rows, LANE), dtype),
        grid_spec=pltpu.PrefetchScalarGridSpec(
            num_scalar_prefetch=0,
            grid=grid,
            in_specs=[pl.BlockSpec((tile_rows, LANE), lambda i: (i, 0))],
            out_specs=pl.BlockSpec((tile_rows, LANE), lambda i: (i, 0)),
        ),
        compiler_params=pltpu.CompilerParams(
            dimension_semantics=("parallel",),
        ),
    )(x2d)

    out_flat = out2d.reshape(-1)
    if pad:
        out_flat = out_flat[:n]
    return out_flat.reshape(orig_shape)


if __name__ == "__main__":
    key = jax.random.PRNGKey(0)

    # Primary case: NCHW input like the PyTorch module would see.
    x = jax.random.normal(key, (2, 4, 16, 16), dtype=jnp.float32)
    y = glu(x)
    jax.block_until_ready(y)
    y_ref = x * jax.nn.sigmoid(x)
    assert y.shape == x.shape and y.dtype == x.dtype
    assert jnp.allclose(y, y_ref, atol=1e-6, rtol=1e-6)

    # Awkward size: exercises the pad + partial-last-block path.
    x2 = jax.random.normal(jax.random.PRNGKey(1), (3, 5, 7, 11), dtype=jnp.float32)
    y2 = glu(x2)
    jax.block_until_ready(y2)
    y2_ref = x2 * jax.nn.sigmoid(x2)
    assert y2.shape == x2.shape and y2.dtype == x2.dtype
    assert jnp.allclose(y2, y2_ref, atol=1e-6, rtol=1e-6)

    print("KERNEL_OK")
</pallas_src>

<mosaic_0001>
module attributes {stable_mosaic.version = 11 : i64} {
  func.func @_glu_kernel(%arg0: i32, %arg1: memref<8x128xf32, #tpu.memory_space<vmem>>, %arg2: memref<8x128xf32, #tpu.memory_space<vmem>>) attributes {dimension_semantics = [#tpu.dimension_semantics<parallel>], iteration_bounds = array<i64: 2>, scalar_prefetch = 0 : i64, scratch_operands = 0 : i64, tpu.core_type = #tpu.core_type<tc>, window_params = [{transform_indices = @transform_0, window_bounds = array<i64: 8, 128>}, {transform_indices = @transform_1, window_bounds = array<i64: 8, 128>}]} {
    %c0 = arith.constant 0 : index
    %c0_0 = arith.constant 0 : index
    %0 = vector.load %arg1[%c0, %c0_0] : memref<8x128xf32, #tpu.memory_space<vmem>>, vector<8x128xf32>
    %1 = arith.negf %0 : vector<8x128xf32>
    %2 = math.exp %1 : vector<8x128xf32>
    %cst = arith.constant 1.000000e+00 : f32
    %3 = vector.broadcast %cst : f32 to vector<8x128xf32>
    %4 = arith.addf %3, %2 : vector<8x128xf32>
    %5 = arith.divf %3, %4 : vector<8x128xf32>
    %6 = arith.mulf %0, %5 : vector<8x128xf32>
    %c0_1 = arith.constant 0 : index
    %c0_2 = arith.constant 0 : index
    %7 = vector.load %arg2[%c0_1, %c0_2] : memref<8x128xf32, #tpu.memory_space<vmem>>, vector<8x128xf32>
    tpu.vector_store %arg2[%c0_1, %c0_2], %6 {strides = array<i32>} : memref<8x128xf32, #tpu.memory_space<vmem>>, vector<8x128xf32>,
    return
  }
  func.func @transform_0(%arg0: i32) -> (i32, i32) {
    %c0_i32 = arith.constant 0 : i32
    %c0_i32_0 = arith.constant 0 : i32
    return %arg0, %c0_i32 : i32, i32
  }
  func.func @transform_1(%arg0: i32) -> (i32, i32) {
    %c0_i32 = arith.constant 0 : i32
    %c0_i32_0 = arith.constant 0 : i32
    return %arg0, %c0_i32 : i32, i32
  }
}

</mosaic_0001>

<bundles_post_ra>
// kernel: tpu_custom_call.1
= control target key start
LH: loop header
LB: loop body
LE: loop exit
PB: predicated region body
PF: predicated region fallthrough
CT: control target
= control target key end

     0   :  { %6 = vsyncpa [#allocation3], 0  ;;  %s535_s0 = inlined_call_operand.hbm [shape: f32[16,128], index: 0, kind: input, shape index: {}]   ;;  %s536_s1 = inlined_call_operand.hbm [shape: f32[16,128], index: 1, kind: output, shape index: {}]  }
   0x1   :  { %8 = vsyncpa [#allocation3 + $0x1], 0 }
   0x2   :  { %9 = vsyncpa [#allocation4], 0 }
   0x3   :  { %11 = vsyncpa [#allocation4 + $0x1], 0  ;;  %s394_s6 = smov 0   ;;  %s396_s7 = smov 0  }
   0x4   :  { %s398_s8 = smov 0   ;;  %s400_s9 = smov 0  }
   0x5 LB: > { %s415_s10 = sadd.s32 4294967295, %s380_s9   ;;  %s225_s11 = sadd.s32 4294967294, %s380_s9   ;;  %s380_s9 = sphi %s400_s9, %s553_s9   ;;  %s376_s8 = sphi %s398_s8, %s552_s8   ;;  %s372_s7 = sphi %s396_s7, %s551_s7   ;;  %s368_s6 = sphi %s394_s6, %s550_s6  }
   0x6   : > { %s419_s12 = sadd.s32 1, %s380_s9   ;;  %s24_s13 = sadd.s32 1, %s376_s8 }
   0x7   : > { %s21_s14 = ssub.s32 %s380_s9, %s419_s12  ;;  %p31_p0 = scmp.ne.s32.totalorder %s376_s8, %s372_s7 }
   0x8   : > { %p22_p1 = scmp.eq.s32.totalorder %s21_s14, 0  ;;  %p32_p2 = scmp.eq.s32.totalorder %s380_s9, 0 }
   0x9   : > { %p37_p3 = scmp.ne.s32.totalorder %s372_s7, %s368_s6  ;;  %p38_p4 = scmp.eq.s32.totalorder %s415_s10, 0 }
   0xa   : > { %s431_s15 = scalar_select %p22_p1, %s376_s8, %s24_s13  }
   0xb   : > { %p433_p5 = por %p32_p2, %p31_p0  ;;  %p437_p6 = por %p38_p4, %p37_p3 }
   0xc   : > { %p61_p7 = scmp.eq.s32.totalorder %s415_s10, 1  ;;  %p67_p8 = scmp.eq.s32.totalorder %s225_s11, 1 }
   0xd   : > { %s540_s17 = scalar_select %p437_p6, 1, 0 }
   0xe   : > { %p250_p10 = scmp.lt.s32.totalorder %s380_s9, 2  ;;  %p444_p11 = por %p61_p7, %p31_p0 }
   0xf   : > { %p448_p12 = por %p67_p8, %p37_p3  ;;  %s87_s20 = sand.u32 1, %s376_s8  }
  0x10   : > { %s541_s18 = scalar_select %p444_p11, 1, 0 }
  0x11   : > { %s542_s19 = scalar_select %p448_p12, 1, 0 }
  0x12   : > { %s229_s21 = sshll.u32 %s380_s9, 7  ;;  %s228_s22 = sshll.u32 %s87_s20, 3 }
  0x13   : > { %s457_s25 = scalar_lea.hbm %s535_s0, %s229_s21  ;;  %s91_s26 = scalar_lea.vmem [#allocation2], %s228_s22 }
  0x14   : > { %s98_s27 = sshll.u32 %s91_s26, 4  ;;  %p461_p13 = pnand %p250_p10, %p433_p5  ;;  %s465_s27 = int_to_ptr.vmem [resolvable:$true] %s98_s27 }
  0x15   : > { %s88_s29 = scalar_lea.sflag [#allocation3], %s87_s20  ;;  %s288_s30 = scalar_lea.hbm %s457_s25, 128 }
  0x16   : > { %p289_p2 = scmp.ne.s32.totalorder %s457_s25, %s288_s30  ;;  %p290_p3 = pneg %p461_p13 }
  0x17   : > { %s293_s4 = scalar_lea.hbm %s535_s0, 256  ;;  %p294_p5 = scmp.lt.s32.totalorder %s457_s25, %s535_s0 }
  0x18   : > { %p291_p4 = pnand %p290_p3, %p289_p2  ;;  %p295_p8 = scmp.lt.s32.totalorder %s293_s4, %s288_s30 }
  0x1a   : > { %p292_p7 = pneg %p291_p4  ;;  %p296_p10 = por %p295_p8, %p294_p5 }
  0x1c   : > { %p297_p9 = pnand %p296_p10, %p292_p7 }
  0x1e   : > { %300 = shalt.err (!%p297_p9)
}
  0x1f   : > { %s301_s13 = scalar_lea.vmem %s465_s27, 128  ;;  %s382_s14 = smov [#allocation2]  }
  0x20   : > { %p302_p0 = scmp.ne.s32.totalorder %s465_s27, %s301_s13  ;;  %s306_s16 = sshll.u32 %s382_s14, 4  ;;  %s307_s16 = int_to_ptr.vmem [resolvable:$false] %s306_s16 }
  0x21   : > { %s308_s20 = scalar_lea.vmem %s307_s16, 256  ;;  %p309_p4 = scmp.lt.s32.totalorder %s465_s27, %s307_s16 }
  0x22   : > { %p304_p1 = pnand %p302_p0, %p290_p3  ;;  %p310_p12 = scmp.lt.s32.totalorder %s308_s20, %s301_s13 }
  0x24   : > { %p305_p2 = pneg %p304_p1  ;;  %p311_p11 = por %p310_p12, %p309_p4 }
  0x26   : > { %p312_p6 = pnand %p311_p11, %p305_p2 }
  0x28   : > { %315 = shalt.err (!%p312_p6)
}
  0x29   : > { %245 = dma.hbm_to_vmem [thread:$0]  (!%p461_p13), %s457_s25, 128, %s465_s27, %s88_s29  }
  0x2a   : > { %p544_p9 = scmp.lt.s32.totalorder %s380_s9, 3  ;;  %p545_p7 = scmp.ge.s32.totalorder %s380_s9, 1 }
  0x2c   : > { %p104_p0 = pnand %p545_p7, %p544_p9 }
  0x2d   : > { %s492_s21 = sand.u32 (!%p104_p0), 1, %s372_s7   ;;  %p546_p6 = scmp.ne.s32.totalorder (!%p104_p0), %s540_s17, 0 }
  0x2e   : > { %107 = sbr.rel (%p104_p0) target bundleno = 100 (0x64), region = 24  ;;  %s231_s22 = sshll.u32 (!%p104_p0), %s492_s21, 3 }
  0x2f   : > { %s110_s23 = scalar_lea.sflag (!%p104_p0), [#allocation3], %s492_s21  ;;  %s113_s24 = scalar_lea.vmem (!%p104_p0), [#allocation2], %s231_s22 }
  0x33   : > { %359 = dma.done.wait (%p546_p6), %s110_s23, 128  }
  0x34   : > { %361 = vsyncadd (%p546_p6), %s110_s23, 4294967168  ;;  %v132_v0 = vld [vmem:[%s113_s24] sm:$0xff]  ;;  %s131_s25 = scalar_lea.vmem [#allocation5], %s231_s22  ;;  %s235_s27 = sshll.u32 %s415_s10, 7 }
  0x35   : > { %v233_v1 = vmul.f32 -1.442695, %v132_v0  ;;  %s155_s26 = sshll.u32 %s131_s25, 4  ;;  %s153_s17 = scalar_lea.hbm %s536_s1, %s235_s27  ;;  %s156_s26 = int_to_ptr.vmem [resolvable:$true] %s155_s26 }
  0x36   : > { %s142_s30 = scalar_lea.sflag [#allocation4], %s492_s21  ;;  %s316_s2 = scalar_lea.vmem %s156_s26, 128 }
  0x37   : > { %284 = vpow2.f32 %v233_v1  ;;  %p317_p11 = scmp.ne.s32.totalorder %s156_s26, %s316_s2  ;;  %p547_p12 = scmp.ne.s32.totalorder %s541_s18, 0 }
  0x38   : > { %s383_s3 = smov [#allocation5]  }
  0x39   : > { %p318_p13 = pnand %p317_p11, %p547_p12  ;;  %s320_s4 = sshll.u32 %s383_s3, 4  ;;  %s321_s4 = int_to_ptr.vmem [resolvable:$false] %s320_s4 }
  0x3a   : > { %s322_s5 = scalar_lea.vmem %s321_s4, 256  ;;  %p323_p3 = scmp.lt.s32.totalorder %s156_s26, %s321_s4 }
  0x3b   : > { %p319_p1 = pneg %p318_p13  ;;  %p324_p5 = scmp.lt.s32.totalorder %s322_s5, %s316_s2 }
  0x3d   : > { %p325_p8 = por %p324_p5, %p323_p3 }
  0x3f   : > { %p326_p10 = pnand %p325_p8, %p319_p1 }
  0x44   : > { %v285_v2 = vpop.eup %284 }
  0x45   : > { %v136_v3 = vadd.f32 1.0, %v285_v2 }
  0x47   : > { %286 = vrcp.f32 %v136_v3 }
  0x54   : > { %v287_v4 = vpop.eup %286 }
  0x55   : > { %v139_v5 = vmul.f32 %v287_v4, %v132_v0 }
  0x57   : > { %140 = vst [vmem:[%s131_s25] sm:$0xff] %v139_v5 }
  0x58   : > { %329 = shalt.err (!%p326_p10)
}
  0x59   : > { %s330_s10 = scalar_lea.hbm %s153_s17, 128  ;;  %s334_s14 = scalar_lea.hbm %s536_s1, 256 }
  0x5a   : > { %p331_p2 = scmp.ne.s32.totalorder %s153_s17, %s330_s10  ;;  %p335_p7 = scmp.lt.s32.totalorder %s153_s17, %s536_s1 }
  0x5b   : > { %p336_p0 = scmp.lt.s32.totalorder %s334_s14, %s330_s10 }
  0x5c   : > { %p332_p4 = pnand %p331_p2, %p547_p12 }
  0x5d   : > { %p337_p6 = por %p336_p0, %p335_p7 }
  0x5e   : > { %p333_p9 = pneg %p332_p4 }
  0x60   : > { %p338_p11 = pnand %p337_p6, %p333_p9 }
  0x62   : > { %341 = shalt.err (!%p338_p11)
}
  0x63   : > { %240 = dma.vmem_to_hbm [thread:$0]  (%p547_p12), %s156_s26, 128, %s153_s17, %s142_s30  }
  0x64 PF: > { %s167_s21 = sand.u32 1, %s368_s6   ;;  %p548_p13 = scmp.ne.s32.totalorder %s542_s19, 0 }
  0x65   : > { %p549_p1 = scmp.ge.s32.totalorder %s380_s9, 2  ;;  %s168_s22 = scalar_lea.sflag [#allocation4], %s167_s21 }
  0x67   : > { %p247_p3 = pnand %p549_p1, %p548_p13 }
  0x69   : > { %p248_p5 = pneg %p247_p3 }
  0x6b   : > { %363 = dma.done.wait (%p248_p5), %s168_s22, 128  }
  0x6c   : > { %365 = vsyncadd (%p248_p5), %s168_s22, 4294967168  ;;  %p14_p8 = scmp.ge.s32.totalorder %s419_s12, 4   ;;  %s550_s6 = smov %s372_s7 }
  0x6d   : > { %s551_s7 = smov %s376_s8  ;;  %s552_s8 = smov %s431_s15 }
  0x6e   : > { %s553_s9 = smov %s419_s12  ;;  %16 = sbr.rel (!%p14_p8) target bundleno = 5 (0x5), region = 69 }
  0x73   :  { %173 = vsyncpa [#allocation3], 1 }
  0x74   :  { %175 = vsyncpa [#allocation3 + $0x1], 1 }
  0x75   :  { %176 = vsyncpa [#allocation4], 1 }
  0x76   :  { %178 = vsyncpa [#allocation4 + $0x1], 1 }

</bundles_post_ra>
